<compile_context>
chip_gen: v5e
topology: v5e:2x2
jax: 0.10.0
libtpu: 0.0.40
codegen_flags: <defaults>
</compile_context>

<pallas_src>
import jax
import jax.numpy as jnp
from jax.experimental import pallas as pl
from jax.experimental.pallas import tpu as pltpu

_SAMPLES_PER_ROW = 128                       # samples packed per 384-lane row
_LANES_PER_ROW = _SAMPLES_PER_ROW * 3        # 384 lanes (3 vregs wide)
_TILE_R_MAX = 2048                           # rows per grid step (3 MiB f32 block)
_PALLAS_MIN_BATCH = 16384                    # below this, plain XLA is faster


def _round_up(n, m):
    return ((n + m - 1) // m) * m


def _fold_affine(params):
    """Fold Linear->Dropout(eval)->Linear->Dropout(eval)->Linear into (W, b)."""
    w1, b1 = params["w1"], params["b1"]      # (3,16), (16,)
    w2, b2 = params["w2"], params["b2"]      # (16,6), (6,)
    w3, b3 = params["w3"], params["b3"]      # (6,3),  (3,)
    w = w1 @ w2 @ w3                         # (3, 3)  [in_feat, out_feat]
    b = (b1 @ w2 + b2) @ w3 + b3             # (3,)
    return w, b


def _lane_coefficients(w, b):
    """Per-lane coefficients for the interleaved (.., 384) layout.

    Lane p holds feature j = p % 3 of sample p // 3.  The output at lane p is
        out[p] = sum_{d=-2..2} x[p + d] * C_d[p] + bias[p]
    with C_d[p] = W[j + d, j] when 0 <= j + d <= 2, else 0, and bias[p] = b[j].
    Returns a (6, 384) array: rows 0..4 = C_{-2..+2}, row 5 = bias.
    """
    j = jnp.arange(_LANES_PER_ROW) % 3
    rows = []
    for d in (-2, -1, 0, 1, 2):
        k = j + d                                            # input-feature index
        valid = (k >= 0) & (k <= 2)
        rows.append(jnp.where(valid, w[jnp.clip(k, 0, 2), j], 0.0))
    rows.append(b[j])
    return jnp.stack(rows, axis=0).astype(jnp.float32)       # (6, 384)


def _mlp_kernel(x_ref, c_ref, o_ref):
    """Folded affine MLP on an interleaved lane-dense tile.

    x_ref: (tile_r, 384)  128 samples per row, features interleaved on lanes
    c_ref: (6, 384)       per-lane coefficients (VMEM-resident across the grid)
    o_ref: (tile_r, 384)  same layout as the input
    """
    x = x_ref[...]
    c = c_ref[...]
    n = x.shape[-1]                                          # 384 (static)

    # d = 0 diagonal term with the bias folded into the first MAC.
    acc = x * c[2:3, :] + c[5:6, :]
    # Neighbour terms: lane rolls ride on the XLU slot and hide under the DMA.
    # Circular wrap of the roll never leaks between samples because the wrapped
    # lanes always meet a zero coefficient (see _lane_coefficients).
    acc = acc + pltpu.roll(x, shift=2, axis=1) * c[0:1, :]        # d = -2
    acc = acc + pltpu.roll(x, shift=1, axis=1) * c[1:2, :]        # d = -1
    acc = acc + pltpu.roll(x, shift=n - 1, axis=1) * c[3:4, :]    # d = +1
    acc = acc + pltpu.roll(x, shift=n - 2, axis=1) * c[4:5, :]    # d = +2

    o_ref[...] = acc.astype(o_ref.dtype)


def _mlp_forward_pallas(x, w, b):
    """Pallas path for large batches. x: (B, 3) float32."""
    B = x.shape[0]
    Bp = _round_up(B, _SAMPLES_PER_ROW)
    if Bp != B:
        # Only non-multiple-of-128 batches pay this extra pass; padded rows are
        # dropped again by the final slice.
        x = jnp.pad(x, ((0, Bp - B), (0, 0)))

    R = Bp // _SAMPLES_PER_ROW
    xr = jnp.reshape(x, (R, _LANES_PER_ROW))         # free: row-major compatible
    coef = _lane_coefficients(w, b)                   # (6, 384), tiny

    tile_r = min(_TILE_R_MAX, R)                      # full dim or multiple of 8
    grid = (pl.cdiv(R, tile_r),)                      # last block may be partial

    out_r = pl.pallas_call(
        _mlp_kernel,
        out_shape=jax.ShapeDtypeStruct((R, _LANES_PER_ROW), x.dtype),
        grid=grid,
        in_specs=[
            pl.BlockSpec((tile_r, _LANES_PER_ROW), lambda i: (i, 0)),  # x stream
            pl.BlockSpec((6, _LANES_PER_ROW), lambda i: (0, 0)),       # coeffs
        ],
        out_specs=pl.BlockSpec((tile_r, _LANES_PER_ROW), lambda i: (i, 0)),
        compiler_params=pltpu.CompilerParams(
            dimension_semantics=("parallel",),        # shard row-blocks on v7x TCs
            vmem_limit_bytes=32 * 1024 * 1024,        # ~12 MiB used; safe on all gens
        ),
        cost_estimate=pl.CostEstimate(
            flops=2 * 3 * 3 * Bp,                     # 9 MACs per sample
            transcendentals=0,
            bytes_accessed=2 * Bp * 3 * 4 + 6 * _LANES_PER_ROW * 4,
        ),
    )(xr, coef)

    out = jnp.reshape(out_r, (Bp, 3))                 # free reshape back
    if Bp != B:
        out = out[:B]
    return out


def mlp_forward(x, params, *, training=False, force_pallas=False):
    """Eval-mode forward of Model_MLP. x: (B, 3) float32 -> (B, 3) float32."""
    if training:
        # TODO(synk): training-mode dropout not implemented (affine folding invalid).
        raise NotImplementedError("Model_MLP Pallas kernel supports eval mode only.")

    w, b = _fold_affine(params)
    B = x.shape[0]
    if not force_pallas and B < _PALLAS_MIN_BATCH:
        # Small-batch fast path: kernel launch cost dwarfs 9 MACs/row in XLA.
        return x @ w + b
    return _mlp_forward_pallas(x, w, b)


def init_params(key):
    """Deterministic init mimicking nn.Linear defaults (uniform +-1/sqrt(fan_in))."""
    def linear(key, fan_in, fan_out):
        kw, kb = jax.random.split(key)
        bound = 1.0 / jnp.sqrt(fan_in)
        w = jax.random.uniform(kw, (fan_in, fan_out), jnp.float32, -bound, bound)
        b = jax.random.uniform(kb, (fan_out,), jnp.float32, -bound, bound)
        return w, b

    k1, k2, k3 = jax.random.split(key, 3)
    w1, b1 = linear(k1, 3, 16)
    w2, b2 = linear(k2, 16, 6)
    w3, b3 = linear(k3, 6, 3)
    return {"w1": w1, "b1": b1, "w2": w2, "b2": b2, "w3": w3, "b3": b3}


def _reference_forward(x, p):
    h = x @ p["w1"] + p["b1"]          # dropout = identity in eval mode
    h = h @ p["w2"] + p["b2"]
    return h @ p["w3"] + p["b3"]


if __name__ == "__main__":
    key = jax.random.PRNGKey(0)
    kx0, kx1, kx2, kp = jax.random.split(key, 4)
    params = init_params(kp)

    # 1) Tiny batch (module-sized input): exercises the small-batch fast path.
    x_small = jax.random.normal(kx0, (8, 3), jnp.float32)
    out_small = jax.block_until_ready(mlp_forward(x_small, params))
    ref_small = _reference_forward(x_small, params)
    assert out_small.shape == (8, 3)
    assert jnp.allclose(out_small, ref_small, atol=1e-5, rtol=1e-4)

    # 2) Batch that is a multiple of 128: exercises the Pallas kernel (no pad).
    x_mid = jax.random.normal(kx1, (640, 3), jnp.float32)
    out_mid = jax.block_until_ready(mlp_forward(x_mid, params, force_pallas=True))
    ref_mid = _reference_forward(x_mid, params)
    assert out_mid.shape == (640, 3)
    assert jnp.allclose(out_mid, ref_mid, atol=1e-5, rtol=1e-4)

    # 3) Ragged batch: exercises the padded / sliced Pallas path.
    x_rag = jax.random.normal(kx2, (200, 3), jnp.float32)
    out_rag = jax.block_until_ready(mlp_forward(x_rag, params, force_pallas=True))
    ref_rag = _reference_forward(x_rag, params)
    assert out_rag.shape == (200, 3)
    assert jnp.allclose(out_rag, ref_rag, atol=1e-5, rtol=1e-4)

    print("KERNEL_OK")
</pallas_src>

<mosaic_0001>
module attributes {stable_mosaic.version = 11 : i64} {
  func.func @_mlp_kernel(%arg0: i32, %arg1: memref<5x384xf32, #tpu.memory_space<vmem>>, %arg2: memref<6x384xf32, #tpu.memory_space<vmem>>, %arg3: memref<5x384xf32, #tpu.memory_space<vmem>>) attributes {dimension_semantics = [#tpu.dimension_semantics<parallel>], iteration_bounds = array<i64: 1>, scalar_prefetch = 0 : i64, scratch_operands = 0 : i64, tpu.core_type = #tpu.core_type<tc>, window_params = [{transform_indices = @transform_0, window_bounds = array<i64: 5, 384>}, {pipeline_mode = #tpu.pipeline_mode<synchronous>, transform_indices = @transform_1, window_bounds = array<i64: 6, 384>}, {transform_indices = @transform_2, window_bounds = array<i64: 5, 384>}]} {
    %c0 = arith.constant 0 : index
    %c0_0 = arith.constant 0 : index
    %0 = vector.load %arg1[%c0, %c0_0] : memref<5x384xf32, #tpu.memory_space<vmem>>, vector<5x384xf32>
    %c0_1 = arith.constant 0 : index
    %c0_2 = arith.constant 0 : index
    %1 = vector.load %arg2[%c0_1, %c0_2] : memref<6x384xf32, #tpu.memory_space<vmem>>, vector<6x384xf32>
    %2 = vector.extract_strided_slice %1 {offsets = [2, 0], sizes = [1, 384], strides = [1, 1]} : vector<6x384xf32> to vector<1x384xf32>
    %3 = vector.broadcast %2 : vector<1x384xf32> to vector<5x384xf32>
    %4 = arith.mulf %0, %3 : vector<5x384xf32>
    %5 = vector.extract_strided_slice %1 {offsets = [5, 0], sizes = [1, 384], strides = [1, 1]} : vector<6x384xf32> to vector<1x384xf32>
    %6 = vector.broadcast %5 : vector<1x384xf32> to vector<5x384xf32>
    %7 = arith.addf %4, %6 : vector<5x384xf32>
    %c2_i32 = arith.constant 2 : i32
    %8 = tpu.dynamic_rotate %0 by %c2_i32 dim 1 : vector<5x384xf32>, i32 -> vector<5x384xf32>
    %9 = vector.extract_strided_slice %1 {offsets = [0, 0], sizes = [1, 384], strides = [1, 1]} : vector<6x384xf32> to vector<1x384xf32>
    %10 = vector.broadcast %9 : vector<1x384xf32> to vector<5x384xf32>
    %11 = arith.mulf %8, %10 : vector<5x384xf32>
    %12 = arith.addf %7, %11 : vector<5x384xf32>
    %c1_i32 = arith.constant 1 : i32
    %13 = tpu.dynamic_rotate %0 by %c1_i32 dim 1 : vector<5x384xf32>, i32 -> vector<5x384xf32>
    %14 = vector.extract_strided_slice %1 {offsets = [1, 0], sizes = [1, 384], strides = [1, 1]} : vector<6x384xf32> to vector<1x384xf32>
    %15 = vector.broadcast %14 : vector<1x384xf32> to vector<5x384xf32>
    %16 = arith.mulf %13, %15 : vector<5x384xf32>
    %17 = arith.addf %12, %16 : vector<5x384xf32>
    %c383_i32 = arith.constant 383 : i32
    %18 = tpu.dynamic_rotate %0 by %c383_i32 dim 1 : vector<5x384xf32>, i32 -> vector<5x384xf32>
    %19 = vector.extract_strided_slice %1 {offsets = [3, 0], sizes = [1, 384], strides = [1, 1]} : vector<6x384xf32> to vector<1x384xf32>
    %20 = vector.broadcast %19 : vector<1x384xf32> to vector<5x384xf32>
    %21 = arith.mulf %18, %20 : vector<5x384xf32>
    %22 = arith.addf %17, %21 : vector<5x384xf32>
    %c382_i32 = arith.constant 382 : i32
    %23 = tpu.dynamic_rotate %0 by %c382_i32 dim 1 : vector<5x384xf32>, i32 -> vector<5x384xf32>
    %24 = vector.extract_strided_slice %1 {offsets = [4, 0], sizes = [1, 384], strides = [1, 1]} : vector<6x384xf32> to vector<1x384xf32>
    %25 = vector.broadcast %24 : vector<1x384xf32> to vector<5x384xf32>
    %26 = arith.mulf %23, %25 : vector<5x384xf32>
    %27 = arith.addf %22, %26 : vector<5x384xf32>
    %c0_3 = arith.constant 0 : index
    %c0_4 = arith.constant 0 : index
    %28 = vector.load %arg3[%c0_3, %c0_4] : memref<5x384xf32, #tpu.memory_space<vmem>>, vector<5x384xf32>
    tpu.vector_store %arg3[%c0_3, %c0_4], %27 {strides = array<i32>} : memref<5x384xf32, #tpu.memory_space<vmem>>, vector<5x384xf32>,
    return
  }
  func.func @transform_0(%arg0: i32) -> (i32, i32) {
    %c0_i32 = arith.constant 0 : i32
    %c0_i32_0 = arith.constant 0 : i32
    return %arg0, %c0_i32 : i32, i32
  }
  func.func @transform_1(%arg0: i32) -> (i32, i32) {
    %c0_i32 = arith.constant 0 : i32
    %c0_i32_0 = arith.constant 0 : i32
    %c0_i32_1 = arith.constant 0 : i32
    return %c0_i32, %c0_i32_0 : i32, i32
  }
  func.func @transform_2(%arg0: i32) -> (i32, i32) {
    %c0_i32 = arith.constant 0 : i32
    %c0_i32_0 = arith.constant 0 : i32
    return %arg0, %c0_i32 : i32, i32
  }
}

</mosaic_0001>

<bundles_post_ra>
// kernel: tpu_custom_call.1
= control target key start
LH: loop header
LB: loop body
LE: loop exit
PB: predicated region body
PF: predicated region fallthrough
CT: control target
= control target key end

     0   :  { %7 = vsyncpa [#allocation3], 0  ;;  %s315_s0 = inlined_call_operand.hbm [shape: f32[5,384], index: 0, kind: input, shape index: {}]   ;;  %s316_s1 = inlined_call_operand.hbm [shape: f32[6,384], index: 1, kind: input, shape index: {}]   ;;  %s317_s2 = inlined_call_operand.hbm [shape: f32[5,384], index: 2, kind: output, shape index: {}]  }
   0x1   :  { %8 = vsyncpa [#allocation6], 0 }
   0x2   :  { %9 = vsyncpa [#allocation4], 0  ;;  %s15_s11 = sshll.u32 %s315_s0, 4  ;;  %s242_s12 = smov [#allocation2]   ;;  %s16_s11 = int_to_ptr.hbm [resolvable:$true] %s15_s11 }
   0x3   :  { %s17_s13 = sshll.u32 %s242_s12, 4  ;;  %s26_s16 = sshll.u32 %s316_s1, 4  ;;  %s18_s13 = int_to_ptr.vmem [resolvable:$true] %s17_s13  ;;  %s27_s16 = int_to_ptr.hbm [resolvable:$true] %s26_s16 }
   0x4   :  { %20 = dma.hbm_to_vmem [thread:$0]  %s16_s11, 384, %s18_s13, [#allocation3]  }
   0x5   :  { %s243_s17 = smov [#allocation5]  }
   0x6   :  { %s28_s18 = sshll.u32 %s243_s17, 4  ;;  %s29_s18 = int_to_ptr.vmem [resolvable:$true] %s28_s18 }
   0x7   :  { %31 = dma.hbm_to_vmem [thread:$0]  %s27_s16, 384, %s29_s18, [#allocation6]  }
   0x8   :  { %236 = dma.done.wait [#allocation3], 384  }
   0x9   :  { %237 = vsyncadd [#allocation3], 4294966912 }
   0xa   :  { %238 = dma.done.wait [#allocation6], 384  }
   0xb   :  { %239 = vsyncadd [#allocation6], 4294966912  ;;  %v42_v0 = vld [vmem:[#allocation2 + $0x10] sm:$0x1f]  ;;  %v40_v1 = vld [vmem:[#allocation2] sm:$0x1f]  ;;  %v64_v6 = vlaneseq }
   0xc   :  { %s244_s0 = smov 2   ;;  %v41_v2 = vld [vmem:[#allocation2 + $0x8] sm:$0x1f]  ;;  %s245_s19 = smov 1   ;;  %v270_v7 = vld [vmem:[#allocation5 + $0x8] sm:$0x3f] }
   0xd   :  { %62 = vrot.lane.b32.xlu1 %v42_v0, %s244_s0  ;;  %58 = vrot.lane.b32.xlu0 %v40_v1, %s244_s0  ;;  %s246_s1 = smov 127   ;;  %s247_s20 = smov 126   ;;  %v272_v9 = vld [vmem:[#allocation5] sm:$0x3f]  ;;  %v274_v10 = vld [vmem:[#allocation5 + $0x10] sm:$0x3f] }
   0xe   :  { %81 = vrot.lane.b32.xlu2 %v41_v2, %s245_s19  ;;  %v276_v11 = vand.u32 127, %v64_v6  ;;  %v47_v12 = vperm.slane %v270_v7, 2  ;;  %v46_v13 = vperm.slane %v272_v9, 2  ;;  %v48_v14 = vperm.slane %v274_v10, 2  ;;  %s248_s21 = smov [#allocation7]   ;;  %s146_s25 = sshll.u32 %s317_s2, 4  ;;  %s147_s25 = int_to_ptr.hbm [resolvable:$true] %s146_s25 }
   0xf   :  { %v52_v17 = vperm.slane %v272_v9, 5  ;;  %v53_v19 = vperm.slane %v270_v7, 5  ;;  %v71_v20 = vperm.slane %v270_v7, 0  ;;  %v54_v23 = vperm.slane %v274_v10, 5  ;;  %s144_s22 = sshll.u32 %s248_s21, 4  ;;  %s145_s22 = int_to_ptr.vmem [resolvable:$true] %s144_s22 }
  0x10   :  { %vm66_vm0 = vcmp.lt.s32.totalorder %v276_v11, 2  ;;  %v50_v18 = vmul.f32 %v47_v12, %v41_v2  ;;  %v49_v21 = vmul.f32 %v46_v13, %v40_v1  ;;  %v51_v22 = vmul.f32 %v48_v14, %v42_v0 }
  0x11   :  { %v72_v25 = vperm.slane %v274_v10, 0  ;;  %vm85_vm1 = vcmp.lt.s32.totalorder %v276_v11, 1  ;;  %v91_v27 = vperm.slane %v274_v10, 1  ;;  %v70_v28 = vperm.slane %v272_v9, 0 }
  0x12   :  { %v56_v31 = vadd.f32 %v53_v19, %v50_v18  ;;  %vm104_vm2 = vcmp.lt.s32.totalorder %v276_v11, 127  ;;  %v55_v33 = vadd.f32 %v52_v17, %v49_v21  ;;  %v89_v34 = vperm.slane %v272_v9, 1 }
  0x13   :  { %v90_v35 = vperm.slane %v270_v7, 1  ;;  %v57_v36 = vadd.f32 %v54_v23, %v51_v22  ;;  %v109_v39 = vperm.slane %v270_v7, 3  ;;  %v108_v41 = vperm.slane %v272_v9, 3 }
  0x14   :  { %v110_v48 = vperm.slane %v274_v10, 3  ;;  %vm123_vm3 = vcmp.lt.s32.totalorder %v276_v11, 126  ;;  %v128_v58 = vperm.slane %v270_v7, 4  ;;  %v127_v62 = vperm.slane %v272_v9, 4 }
  0x15   :  { %79 = vrot.lane.b32.xlu1 %v40_v1, %s245_s19  ;;  %60 = vrot.lane.b32.xlu0 %v41_v2, %s244_s0  ;;  %v129_v63 = vperm.slane %v274_v10, 4 }
  0x16   :  { %83 = vrot.lane.b32.xlu2 %v42_v0, %s245_s19 }
  0x1d   :  { %100 = vrot.lane.b32.xlu1 %v41_v2, %s246_s1  ;;  %98 = vrot.lane.b32.xlu0 %v40_v1, %s246_s1 }
  0x1e   :  { %102 = vrot.lane.b32.xlu2 %v42_v0, %s246_s1 }
  0x25   :  { %119 = vrot.lane.b32.xlu1 %v41_v2, %s247_s20  ;;  %117 = vrot.lane.b32.xlu0 %v40_v1, %s247_s20 }
  0x26   :  { %121 = vrot.lane.b32.xlu2 %v42_v0, %s247_s20 }
  0x68   :  { %v82_v3 = vpop.permute.xlu2 %81 }
  0x70   :  { %v84_v8 = vpop.permute.xlu2 %83 }
  0x71   :  { %v86_v43 = vsel %vm85_vm1, %v82_v3, %v84_v8 }
  0x72   :  { %v94_v52 = vmul.f32 %v91_v27, %v86_v43 }
  0x78   :  { %v103_v26 = vpop.permute.xlu2 %102 }
  0x7f   :  { %v63_v4 = vpop.permute.xlu1 %62  ;;  %v59_v5 = vpop.permute.xlu0 %58 }
  0x80   :  { %v69_v30 = vsel %vm66_vm0, %v63_v4, %v59_v5  ;;  %v122_v61 = vpop.permute.xlu2 %121 }
  0x81   :  { %v73_v44 = vmul.f32 %v70_v28, %v69_v30 }
  0x83   :  { %v76_v56 = vadd.f32 %v73_v44, %v55_v33 }
  0x87   :  { %v80_v15 = vpop.permute.xlu1 %79  ;;  %v61_v16 = vpop.permute.xlu0 %60 }
  0x88   :  { %v68_v24 = vsel %vm66_vm0, %v59_v5, %v61_v16  ;;  %v67_v29 = vsel %vm66_vm0, %v61_v16, %v63_v4  ;;  %v88_v37 = vsel %vm85_vm1, %v84_v8, %v80_v15  ;;  %v87_v45 = vsel %vm85_vm1, %v80_v15, %v82_v3 }
  0x89   :  { %v74_v32 = vmul.f32 %v71_v20, %v68_v24  ;;  %v75_v38 = vmul.f32 %v72_v25, %v67_v29  ;;  %v92_v50 = vmul.f32 %v89_v34, %v88_v37  ;;  %v93_v53 = vmul.f32 %v90_v35, %v87_v45 }
  0x8b   :  { %v77_v47 = vadd.f32 %v74_v32, %v56_v31  ;;  %v78_v54 = vadd.f32 %v75_v38, %v57_v36  ;;  %v95_v0 = vadd.f32 %v92_v50, %v76_v56 }
  0x8d   :  { %v96_v59 = vadd.f32 %v93_v53, %v77_v47  ;;  %v97_v2 = vadd.f32 %v94_v52, %v78_v54 }
  0x8f   :  { %v101_v40 = vpop.permute.xlu1 %100  ;;  %v99_v42 = vpop.permute.xlu0 %98 }
  0x90   :  { %v105_v46 = vsel %vm104_vm2, %v101_v40, %v103_v26  ;;  %v106_v49 = vsel %vm104_vm2, %v99_v42, %v101_v40  ;;  %v107_v51 = vsel %vm104_vm2, %v103_v26, %v99_v42 }
  0x91   :  { %v112_v55 = vmul.f32 %v109_v39, %v105_v46  ;;  %v111_v57 = vmul.f32 %v108_v41, %v106_v49  ;;  %v113_v60 = vmul.f32 %v110_v48, %v107_v51 }
  0x93   :  { %v115_v1 = vadd.f32 %v112_v55, %v96_v59  ;;  %v114_v5 = vadd.f32 %v111_v57, %v95_v0  ;;  %v116_v13 = vadd.f32 %v113_v60, %v97_v2 }
  0x97   :  { %v120_v3 = vpop.permute.xlu1 %119  ;;  %v118_v4 = vpop.permute.xlu0 %117 }
  0x98   :  { %v124_v6 = vsel %vm123_vm3, %v120_v3, %v122_v61  ;;  %v125_v8 = vsel %vm123_vm3, %v118_v4, %v120_v3  ;;  %v126_v12 = vsel %vm123_vm3, %v122_v61, %v118_v4 }
  0x99   :  { %v131_v11 = vmul.f32 %v128_v58, %v124_v6  ;;  %v130_v14 = vmul.f32 %v127_v62, %v125_v8  ;;  %v132_v7 = vmul.f32 %v129_v63, %v126_v12 }
  0x9b   :  { %v134_v9 = vadd.f32 %v131_v11, %v115_v1  ;;  %v133_v10 = vadd.f32 %v130_v14, %v114_v5  ;;  %v135_v15 = vadd.f32 %v132_v7, %v116_v13 }
  0x9d   :  { %137 = vst [vmem:[#allocation7 + $0x8] sm:$0x1f] %v134_v9 }
  0x9e   :  { %136 = vst [vmem:[#allocation7] sm:$0x1f] %v133_v10 }
  0x9f   :  { %138 = vst [vmem:[#allocation7 + $0x10] sm:$0x1f] %v135_v15 }
  0xa0   :  { %149 = dma.vmem_to_hbm [thread:$0]  %s145_s22, 384, %s147_s25, [#allocation4]  }
  0xa1   :  { %240 = dma.done.wait [#allocation4], 384  }
  0xa2   :  { %241 = vsyncadd [#allocation4], 4294966912 }
  0xa3   :  { %154 = vsyncpa [#allocation3], 1 }
  0xa4   :  { %155 = vsyncpa [#allocation6], 1 }
  0xa5   :  { %156 = vsyncpa [#allocation4], 1 }

</bundles_post_ra>
